<compile_context>
chip_gen: v7x
topology: tpu7x:2x2x1
jax: 0.10.0
libtpu: 0.0.40
codegen_flags: <defaults>
</compile_context>

<pallas_src>
import math

import jax
import jax.numpy as jnp
from jax.experimental import pallas as pl
from jax.experimental.pallas import tpu as pltpu


def encoder_layer_kernel(x_ref,
                         wqkv_ref, bqkv_ref,
                         wf_ref, bf_ref,
                         gamma_ref, beta_ref,
                         out_ref, attn_ref):
    TB, S, D = x_ref.shape
    x = x_ref[...].astype(jnp.float32)                       # (TB, S, D)
    xf = x.reshape(TB * S, D)                                 # fill MXU M dim

    # Fused Q/K/V projection: one (TB*S, D) @ (D, 3D) matmul on the MXU.
    qkv = jnp.dot(xf, wqkv_ref[...],
                  preferred_element_type=jnp.float32) + bqkv_ref[...]
    inv_temp = 1.0 / math.sqrt(D)
    q = (qkv[:, 0 * D:1 * D] * inv_temp).reshape(TB, S, D)    # scale q (S*D ops)
    k = qkv[:, 1 * D:2 * D].reshape(TB, S, D)
    v = qkv[:, 2 * D:3 * D].reshape(TB, S, D)

    # Batched QK^T: contract last dims directly (no explicit k.T / XLU transpose).
    scores = jnp.einsum("bqd,bkd->bqk", q, k,
                        preferred_element_type=jnp.float32)   # (TB, S, S)

    # Numerically stable softmax; reciprocal on the EUP (approx) instead of VALU divide.
    m = jnp.max(scores, axis=-1, keepdims=True)
    e = jnp.exp(scores - m)
    denom = jnp.sum(e, axis=-1, keepdims=True)
    attn = e * pl.reciprocal(denom, approx=True)
    attn_ref[...] = attn.astype(attn_ref.dtype)

    ctx = jnp.einsum("bqk,bkd->bqd", attn, v,
                     preferred_element_type=jnp.float32)      # (TB, S, D)

    # Output projection.
    proj = jnp.dot(ctx.reshape(TB * S, D), wf_ref[...],
                   preferred_element_type=jnp.float32) + bf_ref[...]
    # TODO(synk): dropout omitted (eval-mode identity; training mask would need pltpu.prng_*)

    # Residual + LayerNorm(eps=1e-6).
    res = proj.reshape(TB, S, D) + x
    mu = jnp.mean(res, axis=-1, keepdims=True)
    var = jnp.mean((res - mu) ** 2, axis=-1, keepdims=True)
    normed = (res - mu) * jax.lax.rsqrt(var + 1e-6)
    out_ref[...] = (normed * gamma_ref[...] + beta_ref[...]).astype(out_ref.dtype)


def _pick_tb(B, S, D):
    """Batch rows per grid step: fill the matmul M dim (~128 rows) while keeping
    the per-step f32 footprint (x/qkv/scores/attn/ctx/out) small."""
    per_elem_bytes = 4 * S * (6 * D + 3 * S)
    vmem_cap = max(1, (8 * 1024 * 1024) // max(per_elem_bytes, 1))
    target = max(1, min(128 // max(S, 1), vmem_cap))
    tb = 1
    for d in range(1, B + 1):
        if B % d == 0 and d <= target:
            tb = d
    return tb


def encoder_layer(x, params, tb=None):
    """x: (B, S, D) float32.  params: dict of weights (see init_params)."""
    B, S, D = x.shape
    if tb is None:
        tb = _pick_tb(B, S, D)

    # Fuse QKV weights/biases in the wrapper (done once, outside the kernel).
    wqkv = jnp.concatenate([params["wq"], params["wk"], params["wv"]], axis=1)  # (D, 3D)
    bqkv = jnp.concatenate([params["bq"], params["bk"], params["bv"]]).reshape(1, 3 * D)

    def const2d(shape):
        return pl.BlockSpec(shape, lambda b: (0, 0))

    in_specs = [
        pl.BlockSpec((tb, S, D), lambda b: (b, 0, 0)),   # x, tb batch rows per step
        const2d((D, 3 * D)), const2d((1, 3 * D)),        # fused Wqkv, bqkv
        const2d((D, D)), const2d((1, D)),                # Wfc, bfc
        const2d((1, D)), const2d((1, D)),                # gamma, beta
    ]
    out_specs = [
        pl.BlockSpec((tb, S, D), lambda b: (b, 0, 0)),   # enc_output
        pl.BlockSpec((tb, S, S), lambda b: (b, 0, 0)),   # attention map
    ]
    out_shape = [
        jax.ShapeDtypeStruct((B, S, D), x.dtype),
        jax.ShapeDtypeStruct((B, S, S), jnp.float32),
    ]

    return pl.pallas_call(
        encoder_layer_kernel,
        grid=(B // tb,),
        in_specs=in_specs,
        out_specs=out_specs,
        out_shape=out_shape,
        compiler_params=pltpu.CompilerParams(
            dimension_semantics=("parallel",),
            vmem_limit_bytes=48 * 1024 * 1024,
        ),
    )(
        x,
        wqkv, bqkv,
        params["wf"], params["bf"].reshape(1, D),
        params["gamma"].reshape(1, D), params["beta"].reshape(1, D),
    )


def init_params(key, d_model):
    ks = jax.random.split(key, 8)
    scale = 1.0 / math.sqrt(d_model)
    mk = lambda k: (jax.random.normal(k, (d_model, d_model), jnp.float32) * scale)
    bk = lambda k: (jax.random.normal(k, (d_model,), jnp.float32) * 0.01)
    return {
        "wq": mk(ks[0]), "bq": bk(ks[1]),
        "wk": mk(ks[2]), "bk": bk(ks[3]),
        "wv": mk(ks[4]), "bv": bk(ks[5]),
        "wf": mk(ks[6]), "bf": bk(ks[7]),
        "gamma": jnp.ones((d_model,), jnp.float32),
        "beta": jnp.zeros((d_model,), jnp.float32),
    }


def encoder_layer_ref(x, p):
    """Pure-JAX reference for correctness checking."""
    q = x @ p["wq"] + p["bq"]
    k = x @ p["wk"] + p["bk"]
    v = x @ p["wv"] + p["bv"]
    d = x.shape[-1]
    scores = jnp.einsum("bqd,bkd->bqk", q, k) / math.sqrt(d)
    attn = jax.nn.softmax(scores, axis=-1)
    ctx = jnp.einsum("bqk,bkd->bqd", attn, v)
    proj = ctx @ p["wf"] + p["bf"]
    res = proj + x
    mu = jnp.mean(res, axis=-1, keepdims=True)
    var = jnp.mean((res - mu) ** 2, axis=-1, keepdims=True)
    out = (res - mu) / jnp.sqrt(var + 1e-6) * p["gamma"] + p["beta"]
    return out, attn


if __name__ == "__main__":
    B, S, D = 2, 8, 32
    key = jax.random.PRNGKey(0)
    kx, kp = jax.random.split(key)
    x = jax.random.normal(kx, (B, S, D), jnp.float32)
    params = init_params(kp, D)

    enc_out, enc_attn = encoder_layer(x, params)
    jax.block_until_ready((enc_out, enc_attn))

    ref_out, ref_attn = encoder_layer_ref(x, params)
    assert enc_out.shape == (B, S, D) and enc_attn.shape == (B, S, S)
    # Tolerances account for the EUP approximate reciprocal in the softmax.
    assert jnp.allclose(enc_out, ref_out, atol=2e-3, rtol=2e-3), \
        float(jnp.max(jnp.abs(enc_out - ref_out)))
    assert jnp.allclose(enc_attn, ref_attn, atol=2e-3, rtol=2e-3), \
        float(jnp.max(jnp.abs(enc_attn - ref_attn)))

    print("KERNEL_OK")
</pallas_src>

<mosaic_0001>
module attributes {stable_mosaic.version = 11 : i64} {
  func.func @encoder_layer_kernel(%arg0: i32, %arg1: memref<2x8x32xf32, #tpu.memory_space<vmem>>, %arg2: memref<32x96xf32, #tpu.memory_space<vmem>>, %arg3: memref<1x96xf32, #tpu.memory_space<vmem>>, %arg4: memref<32x32xf32, #tpu.memory_space<vmem>>, %arg5: memref<1x32xf32, #tpu.memory_space<vmem>>, %arg6: memref<1x32xf32, #tpu.memory_space<vmem>>, %arg7: memref<1x32xf32, #tpu.memory_space<vmem>>, %arg8: memref<2x8x32xf32, #tpu.memory_space<vmem>>, %arg9: memref<2x8x8xf32, #tpu.memory_space<vmem>>) attributes {dimension_semantics = [#tpu.dimension_semantics<parallel>], iteration_bounds = array<i64: 1>, scalar_prefetch = 0 : i64, scratch_operands = 0 : i64, tpu.core_type = #tpu.core_type<tc>, window_params = [{transform_indices = @transform_0, window_bounds = array<i64: 2, 8, 32>}, {pipeline_mode = #tpu.pipeline_mode<synchronous>, transform_indices = @transform_1, window_bounds = array<i64: 32, 96>}, {pipeline_mode = #tpu.pipeline_mode<synchronous>, transform_indices = @transform_2, window_bounds = array<i64: 1, 96>}, {pipeline_mode = #tpu.pipeline_mode<synchronous>, transform_indices = @transform_3, window_bounds = array<i64: 32, 32>}, {pipeline_mode = #tpu.pipeline_mode<synchronous>, transform_indices = @transform_4, window_bounds = array<i64: 1, 32>}, {pipeline_mode = #tpu.pipeline_mode<synchronous>, transform_indices = @transform_5, window_bounds = array<i64: 1, 32>}, {pipeline_mode = #tpu.pipeline_mode<synchronous>, transform_indices = @transform_6, window_bounds = array<i64: 1, 32>}, {transform_indices = @transform_7, window_bounds = array<i64: 2, 8, 32>}, {transform_indices = @transform_8, window_bounds = array<i64: 2, 8, 8>}]} {
    %c0 = arith.constant 0 : index
    %c0_0 = arith.constant 0 : index
    %c0_1 = arith.constant 0 : index
    %0 = vector.load %arg1[%c0, %c0_0, %c0_1] : memref<2x8x32xf32, #tpu.memory_space<vmem>>, vector<2x8x32xf32>
    %1 = vector.shape_cast %0 : vector<2x8x32xf32> to vector<16x32xf32>
    %c0_2 = arith.constant 0 : index
    %c0_3 = arith.constant 0 : index
    %2 = vector.load %arg2[%c0_2, %c0_3] : memref<32x96xf32, #tpu.memory_space<vmem>>, vector<32x96xf32>
    %cst = arith.constant dense<0.000000e+00> : vector<16x96xf32>
    %3 = tpu.matmul %1, %2, %cst {dimension_numbers = #tpu.dot_dimension_numbers<[1], [0], [0], [1], [0, 0, 1, 1], [], []>} : vector<16x32xf32>, vector<32x96xf32>, vector<16x96xf32> -> vector<16x96xf32>
    %c0_4 = arith.constant 0 : index
    %c0_5 = arith.constant 0 : index
    %4 = vector.load %arg3[%c0_4, %c0_5] : memref<1x96xf32, #tpu.memory_space<vmem>>, vector<1x96xf32>
    %5 = vector.broadcast %4 : vector<1x96xf32> to vector<16x96xf32>
    %6 = arith.addf %3, %5 : vector<16x96xf32>
    %7 = vector.extract_strided_slice %6 {offsets = [0, 0], sizes = [16, 32], strides = [1, 1]} : vector<16x96xf32> to vector<16x32xf32>
    %cst_6 = arith.constant 0.176776692 : f32
    %8 = vector.broadcast %cst_6 : f32 to vector<16x32xf32>
    %9 = arith.mulf %7, %8 : vector<16x32xf32>
    %10 = vector.shape_cast %9 : vector<16x32xf32> to vector<2x8x32xf32>
    %11 = vector.extract_strided_slice %6 {offsets = [0, 32], sizes = [16, 32], strides = [1, 1]} : vector<16x96xf32> to vector<16x32xf32>
    %12 = vector.shape_cast %11 : vector<16x32xf32> to vector<2x8x32xf32>
    %13 = vector.extract_strided_slice %6 {offsets = [0, 64], sizes = [16, 32], strides = [1, 1]} : vector<16x96xf32> to vector<16x32xf32>
    %14 = vector.shape_cast %13 : vector<16x32xf32> to vector<2x8x32xf32>
    "tpu.trace_start"() <{level = 10 : i32, message = "bqd,bkd->bqk"}> : () -> ()
    %cst_7 = arith.constant dense<0.000000e+00> : vector<2x8x8xf32>
    %15 = tpu.matmul %10, %12, %cst_7 {dimension_numbers = #tpu.dot_dimension_numbers<[2], [2], [1], [1], [0, 0, 0, 1, 1, 1], [0], [0]>} : vector<2x8x32xf32>, vector<2x8x32xf32>, vector<2x8x8xf32> -> vector<2x8x8xf32>
    "tpu.trace_stop"() : () -> ()
    %cst_8 = arith.constant dense<0xFF800000> : vector<2x8xf32>
    %16 = vector.multi_reduction <maximumf>, %15, %cst_8 [2] : vector<2x8x8xf32> to vector<2x8xf32>
    %17 = vector.shape_cast %16 : vector<2x8xf32> to vector<2x8x1xf32>
    %18 = vector.broadcast %17 : vector<2x8x1xf32> to vector<2x8x8xf32>
    %19 = arith.subf %15, %18 : vector<2x8x8xf32>
    %20 = math.exp %19 : vector<2x8x8xf32>
    %cst_9 = arith.constant dense<0.000000e+00> : vector<2x8xf32>
    %21 = vector.multi_reduction <add>, %20, %cst_9 [2] : vector<2x8x8xf32> to vector<2x8xf32>
    %22 = vector.shape_cast %21 : vector<2x8xf32> to vector<2x8x1xf32>
    %23 = tpu.reciprocal %22 {approx = true} : vector<2x8x1xf32> -> vector<2x8x1xf32>
    %24 = vector.broadcast %23 : vector<2x8x1xf32> to vector<2x8x8xf32>
    %25 = arith.mulf %20, %24 : vector<2x8x8xf32>
    %c0_10 = arith.constant 0 : index
    %c0_11 = arith.constant 0 : index
    %c0_12 = arith.constant 0 : index
    %26 = vector.load %arg9[%c0_10, %c0_11, %c0_12] : memref<2x8x8xf32, #tpu.memory_space<vmem>>, vector<2x8x8xf32>
    tpu.vector_store %arg9[%c0_10, %c0_11, %c0_12], %25 {strides = array<i32>} : memref<2x8x8xf32, #tpu.memory_space<vmem>>, vector<2x8x8xf32>,
    "tpu.trace_start"() <{level = 10 : i32, message = "bqk,bkd->bqd"}> : () -> ()
    %cst_13 = arith.constant dense<0.000000e+00> : vector<2x8x32xf32>
    %27 = tpu.matmul %25, %14, %cst_13 {dimension_numbers = #tpu.dot_dimension_numbers<[2], [1], [1], [2], [0, 0, 0, 1, 1, 2], [0], [0]>} : vector<2x8x8xf32>, vector<2x8x32xf32>, vector<2x8x32xf32> -> vector<2x8x32xf32>
    "tpu.trace_stop"() : () -> ()
    %28 = vector.shape_cast %27 : vector<2x8x32xf32> to vector<16x32xf32>
    %c0_14 = arith.constant 0 : index
    %c0_15 = arith.constant 0 : index
    %29 = vector.load %arg4[%c0_14, %c0_15] : memref<32x32xf32, #tpu.memory_space<vmem>>, vector<32x32xf32>
    %cst_16 = arith.constant dense<0.000000e+00> : vector<16x32xf32>
    %30 = tpu.matmul %28, %29, %cst_16 {dimension_numbers = #tpu.dot_dimension_numbers<[1], [0], [0], [1], [0, 0, 1, 1], [], []>} : vector<16x32xf32>, vector<32x32xf32>, vector<16x32xf32> -> vector<16x32xf32>
    %c0_17 = arith.constant 0 : index
    %c0_18 = arith.constant 0 : index
    %31 = vector.load %arg5[%c0_17, %c0_18] : memref<1x32xf32, #tpu.memory_space<vmem>>, vector<1x32xf32>
    %32 = vector.broadcast %31 : vector<1x32xf32> to vector<16x32xf32>
    %33 = arith.addf %30, %32 : vector<16x32xf32>
    %34 = vector.shape_cast %33 : vector<16x32xf32> to vector<2x8x32xf32>
    %35 = arith.addf %34, %0 : vector<2x8x32xf32>
    %cst_19 = arith.constant dense<0.000000e+00> : vector<2x8xf32>
    %36 = vector.multi_reduction <add>, %35, %cst_19 [2] : vector<2x8x32xf32> to vector<2x8xf32>
    %37 = vector.shape_cast %36 : vector<2x8xf32> to vector<2x8x1xf32>
    %cst_20 = arith.constant 3.200000e+01 : f32
    %38 = vector.broadcast %cst_20 : f32 to vector<2x8x1xf32>
    %39 = arith.divf %37, %38 : vector<2x8x1xf32>
    %40 = vector.broadcast %39 : vector<2x8x1xf32> to vector<2x8x32xf32>
    %41 = arith.subf %35, %40 : vector<2x8x32xf32>
    %42 = arith.mulf %41, %41 : vector<2x8x32xf32>
    %cst_21 = arith.constant dense<0.000000e+00> : vector<2x8xf32>
    %43 = vector.multi_reduction <add>, %42, %cst_21 [2] : vector<2x8x32xf32> to vector<2x8xf32>
    %44 = vector.shape_cast %43 : vector<2x8xf32> to vector<2x8x1xf32>
    %cst_22 = arith.constant 3.200000e+01 : f32
    %45 = vector.broadcast %cst_22 : f32 to vector<2x8x1xf32>
    %46 = arith.divf %44, %45 : vector<2x8x1xf32>
    %47 = vector.broadcast %39 : vector<2x8x1xf32> to vector<2x8x32xf32>
    %48 = arith.subf %35, %47 : vector<2x8x32xf32>
    %cst_23 = arith.constant 9.99999997E-7 : f32
    %49 = vector.broadcast %cst_23 : f32 to vector<2x8x1xf32>
    %50 = arith.addf %46, %49 : vector<2x8x1xf32>
    %51 = math.rsqrt %50 : vector<2x8x1xf32>
    %52 = vector.broadcast %51 : vector<2x8x1xf32> to vector<2x8x32xf32>
    %53 = arith.mulf %48, %52 : vector<2x8x32xf32>
    %c0_24 = arith.constant 0 : index
    %c0_25 = arith.constant 0 : index
    %54 = vector.load %arg6[%c0_24, %c0_25] : memref<1x32xf32, #tpu.memory_space<vmem>>, vector<1x32xf32>
    %55 = vector.shape_cast %54 : vector<1x32xf32> to vector<1x1x32xf32>
    %56 = vector.broadcast %55 : vector<1x1x32xf32> to vector<2x8x32xf32>
    %57 = arith.mulf %53, %56 : vector<2x8x32xf32>
    %c0_26 = arith.constant 0 : index
    %c0_27 = arith.constant 0 : index
    %58 = vector.load %arg7[%c0_26, %c0_27] : memref<1x32xf32, #tpu.memory_space<vmem>>, vector<1x32xf32>
    %59 = vector.shape_cast %58 : vector<1x32xf32> to vector<1x1x32xf32>
    %60 = vector.broadcast %59 : vector<1x1x32xf32> to vector<2x8x32xf32>
    %61 = arith.addf %57, %60 : vector<2x8x32xf32>
    %c0_28 = arith.constant 0 : index
    %c0_29 = arith.constant 0 : index
    %c0_30 = arith.constant 0 : index
    %62 = vector.load %arg8[%c0_28, %c0_29, %c0_30] : memref<2x8x32xf32, #tpu.memory_space<vmem>>, vector<2x8x32xf32>
    tpu.vector_store %arg8[%c0_28, %c0_29, %c0_30], %61 {strides = array<i32>} : memref<2x8x32xf32, #tpu.memory_space<vmem>>, vector<2x8x32xf32>,
    return
  }
  func.func @transform_0(%arg0: i32) -> (i32, i32, i32) {
    %c0_i32 = arith.constant 0 : i32
    %c0_i32_0 = arith.constant 0 : i32
    %c0_i32_1 = arith.constant 0 : i32
    return %arg0, %c0_i32, %c0_i32_0 : i32, i32, i32
  }
  func.func @transform_1(%arg0: i32) -> (i32, i32) {
    %c0_i32 = arith.constant 0 : i32
    %c0_i32_0 = arith.constant 0 : i32
    %c0_i32_1 = arith.constant 0 : i32
    return %c0_i32, %c0_i32_0 : i32, i32
  }
  func.func @transform_2(%arg0: i32) -> (i32, i32) {
    %c0_i32 = arith.constant 0 : i32
    %c0_i32_0 = arith.constant 0 : i32
    %c0_i32_1 = arith.constant 0 : i32
    return %c0_i32, %c0_i32_0 : i32, i32
  }
  func.func @transform_3(%arg0: i32) -> (i32, i32) {
    %c0_i32 = arith.constant 0 : i32
    %c0_i32_0 = arith.constant 0 : i32
    %c0_i32_1 = arith.constant 0 : i32
    return %c0_i32, %c0_i32_0 : i32, i32
  }
  func.func @transform_4(%arg0: i32) -> (i32, i32) {
    %c0_i32 = arith.constant 0 : i32
    %c0_i32_0 = arith.constant 0 : i32
    %c0_i32_1 = arith.constant 0 : i32
    return %c0_i32, %c0_i32_0 : i32, i32
  }
  func.func @transform_5(%arg0: i32) -> (i32, i32) {
    %c0_i32 = arith.constant 0 : i32
    %c0_i32_0 = arith.constant 0 : i32
    %c0_i32_1 = arith.constant 0 : i32
    return %c0_i32, %c0_i32_0 : i32, i32
  }
  func.func @transform_6(%arg0: i32) -> (i32, i32) {
    %c0_i32 = arith.constant 0 : i32
    %c0_i32_0 = arith.constant 0 : i32
    %c0_i32_1 = arith.constant 0 : i32
    return %c0_i32, %c0_i32_0 : i32, i32
  }
  func.func @transform_7(%arg0: i32) -> (i32, i32, i32) {
    %c0_i32 = arith.constant 0 : i32
    %c0_i32_0 = arith.constant 0 : i32
    %c0_i32_1 = arith.constant 0 : i32
    return %arg0, %c0_i32, %c0_i32_0 : i32, i32, i32
  }
  func.func @transform_8(%arg0: i32) -> (i32, i32, i32) {
    %c0_i32 = arith.constant 0 : i32
    %c0_i32_0 = arith.constant 0 : i32
    %c0_i32_1 = arith.constant 0 : i32
    return %arg0, %c0_i32, %c0_i32_0 : i32, i32, i32
  }
}

</mosaic_0001>

<bundles_post_ra>
// kernel: tpu_custom_call.1
= control target key start
LH: loop header
LB: loop body
LE: loop exit
PB: predicated region body
PF: predicated region fallthrough
CT: control target
= control target key end

     0   :  { %14 = vsyncpa [#allocation3], 0  ;;  %s1101_s0 = inlined_call_operand.hbm [shape: f32[2,8,32], index: 0, kind: input, shape index: {}]   ;;  %s1102_s1 = inlined_call_operand.hbm [shape: f32[32,96], index: 1, kind: input, shape index: {}]   ;;  %s1103_s2 = inlined_call_operand.vmem [shape: f32[1,96], index: 2, kind: input, shape index: {}]   ;;  %s1104_s3 = inlined_call_operand.hbm [shape: f32[32,32], index: 3, kind: input, shape index: {}]   ;;  %s1105_s4 = inlined_call_operand.vmem [shape: f32[1,32], index: 4, kind: input, shape index: {}]   ;;  %s1106_s5 = inlined_call_operand.vmem [shape: f32[1,32], index: 5, kind: input, shape index: {}]   ;;  %s1107_s6 = inlined_call_operand.vmem [shape: f32[1,32], index: 6, kind: input, shape index: {}]   ;;  %s1108_s7 = inlined_call_operand.hbm [shape: f32[2,8,32], index: 7, kind: output, shape index: {0}]   ;;  %s1109_s8 = inlined_call_operand.hbm [shape: f32[2,8,8], index: 8, kind: output, shape index: {1}]  }
   0x1   :  { %15 = vsyncpa [#allocation6], 0 }
   0x2   :  { %16 = vsyncpa [#allocation4], 0 }
   0x3   :  { %17 = vsyncpa [#allocation10], 0  ;;  %s909_s27 = smov [#allocation5]   ;;  %s910_s29 = smov [#allocation2]  }
   0x4   :  { %s35_s28 = sshll.u32 %s909_s27, 4  ;;  %s23_s30 = sshll.u32 %s910_s29, 4  ;;  %s36_s28 = int_to_ptr.vmem [resolvable:$true] %s35_s28  ;;  %s965_s30 = int_to_ptr.vmem [resolvable:$true] %s23_s30 }
   0x5   :  { %s791_s11 = scalar_lea.hbm %s1102_s1, 512 }
   0x6   :  { %p792_p0 = scmp.ne.s32.totalorder %s1102_s1, %s791_s11  ;;  %p795_p1 = scmp.lt.u32.totalorder %s791_s11, %s1102_s1 }
   0x8   :  { %p797_p2 = pnand %p795_p1, %p792_p0 }
   0xa   :  { %800 = shalt.err (!%p797_p2)
}
   0xb   :  { %s801_s16 = scalar_lea.vmem %s36_s28, 512  ;;  %p806_p4 = scmp.lt.s32.totalorder %s36_s28, %s36_s28 }
   0xc   :  { %p802_p3 = scmp.ne.s32.totalorder %s36_s28, %s801_s16  ;;  %p807_p5 = scmp.lt.s32.totalorder %s801_s16, %s801_s16 }
   0xe   :  { %p808_p6 = por %p807_p5, %p806_p4 }
  0x10   :  { %p809_p7 = pnand %p808_p6, %p802_p3 }
  0x12   :  { %812 = shalt.err (!%p809_p7)
}
  0x13   :  { %s911_s17 = smov 128   ;;  %s912_s18 = smov 8  }
  0x14   :  { %41 = dma.hbm_to_vmem [thread:$0]  %s1102_s1, 512, %s36_s28, [#allocation6], %s911_s17, %s911_s17, %s912_s18  }
  0x15   :  { %s813_s23 = scalar_lea.hbm %s1101_s0, 256 }
  0x16   :  { %p814_p8 = scmp.ne.s32.totalorder %s1101_s0, %s813_s23  ;;  %p817_p9 = scmp.lt.u32.totalorder %s813_s23, %s1101_s0 }
  0x18   :  { %p819_p10 = pnand %p817_p9, %p814_p8 }
  0x1a   :  { %822 = shalt.err (!%p819_p10)
}
  0x1b   :  { %s823_s29 = scalar_lea.vmem %s965_s30, 256  ;;  %p828_p12 = scmp.lt.s32.totalorder %s965_s30, %s965_s30 }
  0x1c   :  { %p824_p11 = scmp.ne.s32.totalorder %s965_s30, %s823_s29  ;;  %p829_p13 = scmp.lt.s32.totalorder %s823_s29, %s823_s29 }
  0x1e   :  { %p830_p0 = por %p829_p13, %p828_p12 }
  0x20   :  { %p831_p1 = pnand %p830_p0, %p824_p11 }
  0x22   :  { %834 = shalt.err (!%p831_p1)
}
  0x23   :  { %29 = dma.hbm_to_vmem [thread:$0]  %s1101_s0, 256, %s965_s30, [#allocation3], %s911_s17, %s911_s17, %s912_s18  }
  0x24   :  { %s913_s9 = smov [#allocation7]   ;;  %s835_s13 = scalar_lea.hbm %s1104_s3, 512 }
  0x25   :  { %s49_s10 = sshll.u32 %s913_s9, 4  ;;  %p836_p2 = scmp.ne.s32.totalorder %s1104_s3, %s835_s13  ;;  %s50_s10 = int_to_ptr.vmem [resolvable:$true] %s49_s10 }
  0x26   :  { %p839_p3 = scmp.lt.u32.totalorder %s835_s13, %s1104_s3 }
  0x28   :  { %p841_p4 = pnand %p839_p3, %p836_p2 }
  0x2a   :  { %844 = shalt.err (!%p841_p4)
}
  0x2b   :  { %s845_s20 = scalar_lea.vmem %s50_s10, 512  ;;  %p850_p6 = scmp.lt.s32.totalorder %s50_s10, %s50_s10 }
  0x2c   :  { %p846_p5 = scmp.ne.s32.totalorder %s50_s10, %s845_s20  ;;  %p851_p7 = scmp.lt.s32.totalorder %s845_s20, %s845_s20 }
  0x2e   :  { %p852_p8 = por %p851_p7, %p850_p6 }
  0x30   :  { %p853_p9 = pnand %p852_p8, %p846_p5 }
  0x32   :  { %856 = shalt.err (!%p853_p9)
}
  0x33   :  { %55 = dma.hbm_to_vmem [thread:$0]  %s1104_s3, 512, %s50_s10, [#allocation6], %s911_s17, %s911_s17, %s912_s18  }
  0x34   :  { %901 = dma.done.wait [#allocation3], 256  }
  0x35   :  { %902 = vsyncadd [#allocation3], 4294967040 }
  0x36   :  { %903 = dma.done.wait [#allocation6], 1024  }
  0x37   :  { %904 = vsyncadd [#allocation6], 4294966272  ;;  %vm84_vm0 = vcmask 261120   ;;  %v73_v0 = vld [vmem:[#allocation5] sm:$0xff]  ;;  %v74_v1 = vld [vmem:[#allocation5 + $0x8] sm:$0xff]  ;;  %v914_v8 = vmov 0.0  }
  0x38   :  { %v75_v2 = vld [vmem:[#allocation5 + $0x10] sm:$0xff]  ;;  %v752_v3 = vpack.c.bf16 %v74_v1, %v73_v0  ;;  %v76_v4 = vld [vmem:[#allocation5 + $0x18] sm:$0xff]  ;;  %721 = vmatprep.subr.mxu1 %v914_v8  ;;  %vm915_vm1 = vmmov 0   ;;  %s916_s22 = smov 96   ;;  %vm324_vm2 = vcmask 64512   ;;  %v501_v35 = vld [vmem:[#allocation7] sm:$0xff] }
  0x39   :  { %v1017_v5 = vld [vmem:[#allocation2] sm:$0xff]  ;;  %v756_v6 = vpack.c.bf16 %v76_v4, %v75_v2  ;;  %v1021_v7 = vld [vmem:[#allocation2 + $0x8] sm:$0xff]  ;;  %723 = vmatprep.mubr.msk.f32.mxu1 %vm915_vm1, %v914_v8  ;;  %v502_v36 = vld [vmem:[#allocation7 + $0x8] sm:$0xff] }
  0x3a   :  { %718 = vmatprep.mubr.msk.f32.mxu0 %vm84_vm0, %v1017_v5  ;;  %753 = vmatprep.subr.bf16.mxu0 %v752_v3  ;;  %v676_v9 = vld [vmem:[%s1103_s2] ss:$0 sm:$0xff]  ;;  %s917_s2 = smov 64   ;;  %v760_v37 = vpack.c.bf16 %v502_v36, %v501_v35  ;;  %v504_v46 = vld [vmem:[#allocation7 + $0x18] sm:$0xff] }
  0x3b   :  { %755 = vmatpush3.bf16.msra.mxu0 %v752_v3  ;;  %v503_v45 = vld [vmem:[#allocation7 + $0x10] sm:$0xff] }
  0x3c   :  { %757 = vmatprep.subr.bf16.mxu0 %v756_v6  ;;  %v764_v47 = vpack.c.bf16 %v504_v46, %v503_v45  ;;  %v685_v52 = vld [vmem:[%s1105_s4] ss:$0 sm:$0xff]  ;;  %s918_s4 = smov [#allocation9]  }
  0x3d   :  { %s659_s25 = sshll.u32 %s918_s4, 4  ;;  %s660_s25 = int_to_ptr.vmem [resolvable:$true] %s659_s25 }
  0x3e   :  { %s857_s26 = scalar_lea.vmem %s660_s25, 256  ;;  %p862_p11 = scmp.lt.s32.totalorder %s660_s25, %s660_s25 }
  0x3f   :  { %759 = vmatpush3.bf16.msra.mxu0 %v756_v6  ;;  %p858_p10 = scmp.ne.s32.totalorder %s660_s25, %s857_s26  ;;  %p863_p12 = scmp.lt.s32.totalorder %s857_s26, %s857_s26 }
  0x40   :  { %761 = vmatprep.subr.bf16.mxu0 %v760_v37 }
  0x41   :  { %p864_p13 = por %p863_p12, %p862_p11 }
  0x42   :  { %719 = vmatmul.mubr.msk.f32.vlgmr.msra.gmra.mrb[0].mxu0 %vm84_vm0, %v1021_v7 }
  0x43   :  { %763 = vmatpush3.bf16.msra.mxu0 %v760_v37  ;;  %p865_p0 = pnand %p864_p13, %p858_p10 }
  0x44   :  { %765 = vmatprep.subr.bf16.mxu0 %v764_v47 }
  0x47   :  { %767 = vmatpush3.bf16.msra.mxu0 %v764_v47 }
 0x115   :  { %v720_v10 = vpop.f32.mrb[0].mxu0 }
 0x116   :  { %v157_v11 = vpop.f32.mrb[1].mxu0  ;;  %v163_v13 = vadd.f32 %v720_v10, %v676_v9 }
 0x117   :  { %v158_v12 = vadd.f32 %v676_v9, %v157_v11 }
 0x118   :  { %v167_v17 = vmul.f32 0.17677669, %v163_v13 }
 0x119   :  { %169 = vrot.lane.b32.xlu0 %v158_v12, %s916_s22  ;;  %v166_v15 = vmul.f32 0.17677669, %v158_v12 }
 0x11d   :  { %247 = vrot.lane.b32.xlu0 %v163_v13, %s916_s22 }
 0x18b   :  { %v170_v14 = vpop.permute.xlu0 %169 }
 0x18c   :  { %722 = vmatpush3.xpose.msk.msra.mxu1 %vm84_vm0, %v170_v14 }
 0x18d   :  { %726 = vmatprep.subr.mxu1 %v914_v8 }
 0x18f   :  { %v248_v16 = vpop.permute.xlu0 %247  ;;  %724 = vmatmul.mubr.msk.f32.vlgmr.msra.gmra.mrb[0].mxu1 %vm84_vm0, %v166_v15 }
 0x190   :  { %727 = vmatpush3.xpose.msk.msra.mxu1 %vm84_vm0, %v248_v16  ;;  %728 = vmatprep.mubr.msk.f32.mxu1 %vm915_vm1, %v914_v8 }
 0x191   :  { %731 = vmatprep.subr.mxu1 %v914_v8 }
 0x193   :  { %729 = vmatmul.mubr.msk.f32.vlgmr.msra.gmra.mrb[2].mxu1 %vm84_vm0, %v167_v17 }
 0x194   :  { %733 = vmatprep.mubr.msk.f32.mxu1 %vm915_vm1, %v914_v8 }
 0x262   :  { %v242_v18 = vpop.f32.mrb[0].mxu1 }
 0x263   :  { %v725_v19 = vpop.f32.mrb[1].mxu1  ;;  %v325_v20 = vsel %vm324_vm2, %v242_v18, -inf }
 0x264   :  { %326 = vmax.xlane.f32.xlu1 %v325_v20 }
 0x266   :  { %v320_v21 = vpop.f32.mrb[2].mxu1 }
 0x267   :  { %v730_v22 = vpop.f32.mrb[3].mxu1  ;;  %v328_v23 = vsel %vm324_vm2, %v320_v21, -inf }
 0x268   :  { %329 = vmax.xlane.f32.xlu1 %v328_v23 }
 0x279   :  { %349 = vrot.lane.b32.xlu1 %v158_v12, %s917_s2 }
 0x2f1   :  { %v327_v24 = vpop.xlane.xlu1 %326 }
 0x2f2   :  { %v331_v25 = vsub.f32 %v242_v18, %v327_v24 }
 0x2f4   :  { %v333_v26 = vmul.f32 1.442695, %v331_v25 }
 0x2f5   :  { %v330_v27 = vpop.xlane.xlu1 %329 }
 0x2f6   :  { %779 = vpow2.f32 %v333_v26  ;;  %v332_v28 = vsub.f32 %v320_v21, %v330_v27 }
 0x2f8   :  { %v335_v29 = vmul.f32 1.442695, %v332_v28 }
 0x2f9   :  { %v350_v30 = vpop.permute.xlu1 %349 }
 0x2fa   :  { %781 = vpow2.f32 %v335_v29  ;;  %732 = vmatpush3.msra.mxu1 %v350_v30 }
 0x2fb   :  { %736 = vmatprep.subr.mxu1 %v914_v8 }
 0x300   :  { %v780_v31 = vpop.eup %779 }
 0x301   :  { %v337_v32 = vsel %vm324_vm2, %v780_v31, 0.0 }
 0x302   :  { %338 = vadd.xlane.f32.xlu0 %v337_v32 }
 0x304   :  { %v782_v33 = vpop.eup %781 }
 0x305   :  { %v340_v34 = vsel %vm324_vm2, %v782_v33, 0.0 }
 0x306   :  { %341 = vadd.xlane.f32.xlu1 %v340_v34 }
 0x317   :  { %425 = vrot.lane.b32.xlu1 %v163_v13, %s917_s2 }
 0x38f   :  { %v339_v38 = vpop.xlane.xlu0 %338 }
 0x390   :  { %783 = vrcp.f32 %v339_v38 }
 0x393   :  { %v342_v39 = vpop.xlane.xlu1 %341 }
 0x394   :  { %785 = vrcp.f32 %v342_v39 }
 0x397   :  { %v426_v42 = vpop.permute.xlu1 %425 }
 0x39a   :  { %v784_v40 = vpop.eup %783 }
 0x39b   :  { %v345_v41 = vmul.f32 %v784_v40, %v780_v31 }
 0x39d   :  { %347 = vst.msk [vmem:[#allocation9] sm:$0xff] %vm324_vm2, %v345_v41  ;;  %734 = vmatmul.mubr.msk.f32.vlgmr.msra.gmra.mrb[4].mxu1 %vm324_vm2, %v345_v41 }
 0x39e   :  { %v786_v43 = vpop.eup %785  ;;  %737 = vmatpush3.msra.mxu1 %v426_v42  ;;  %738 = vmatprep.mubr.msk.f32.mxu1 %vm915_vm1, %v914_v8 }
 0x39f   :  { %v346_v44 = vmul.f32 %v786_v43, %v782_v33 }
 0x3a1   :  { %348 = vst.msk [vmem:[#allocation9 + $0x8] sm:$0xff] %vm324_vm2, %v346_v44  ;;  %739 = vmatmul.mubr.msk.f32.vlgmr.msra.gmra.mrb[6].mxu1 %vm324_vm2, %v346_v44 }
 0x470   :  { %v421_v48 = vpop.f32.mrb[4].mxu1 }
 0x471   :  { %v735_v49 = vpop.f32.mrb[5].mxu1  ;;  %749 = vmatprep.mubr.msk.f32.mxu0 %vm84_vm0, %v421_v48 }
 0x474   :  { %v497_v50 = vpop.f32.mrb[6].mxu1 }
 0x475   :  { %v740_v51 = vpop.f32.mrb[7].mxu1  ;;  %750 = vmatmul.mubr.msk.f32.vlgmr.msra.gmra.mrb[2].mxu0 %vm84_vm0, %v497_v50 }
 0x548   :  { %v751_v53 = vpop.f32.mrb[2].mxu0 }
 0x549   :  { %v590_v54 = vadd.f32 %v751_v53, %v685_v52  ;;  %v584_v55 = vpop.f32.mrb[3].mxu0 }
 0x54a   :  { %v585_v56 = vadd.f32 %v685_v52, %v584_v55 }
 0x54b   :  { %v594_v57 = vadd.f32 %v590_v54, %v1021_v7 }
 0x54c   :  { %v593_v58 = vadd.f32 %v585_v56, %v1017_v5 }
 0x54d   :  { %v598_v59 = vsel %vm84_vm0, %v594_v57, 0.0 }
 0x54e   :  { %599 = vadd.xlane.f32.xlu0 %v598_v59  ;;  %v595_v60 = vsel %vm84_vm0, %v593_v58, 0.0 }
 0x54f   :  { %596 = vadd.xlane.f32.xlu1 %v595_v60 }
 0x5db   :  { %v600_v61 = vpop.xlane.xlu0 %599 }
 0x5dc   :  { %v603_v62 = vmul.f32 0.03125, %v600_v61  ;;  %v597_v63 = vpop.xlane.xlu1 %596 }
 0x5dd   :  { %v602_v0 = vmul.f32 0.03125, %v597_v63 }
 0x5de   :  { %v605_v1 = vsub.f32 %v594_v57, %v603_v62 }
 0x5df   :  { %v604_v2 = vsub.f32 %v593_v58, %v602_v0 }
 0x5e0   :  { %v607_v6 = vmul.f32 %v605_v1, %v605_v1 }
 0x5e1   :  { %v606_v3 = vmul.f32 %v604_v2, %v604_v2 }
 0x5e2   :  { %v611_v7 = vsel %vm84_vm0, %v607_v6, 0.0 }
 0x5e3   :  { %v608_v4 = vsel %vm84_vm0, %v606_v3, 0.0 }
 0x5e4   :  { %609 = vadd.xlane.f32.xlu0 %v608_v4 }
 0x5e8   :  { %612 = vadd.xlane.f32.xlu0 %v611_v7 }
 0x5e9   :  { %868 = shalt.err (!%p865_p0)
}
 0x5ea   :  { %s869_s1 = scalar_lea.hbm %s1109_s8, 256 }
 0x5eb   :  { %p870_p1 = scmp.ne.s32.totalorder %s1109_s8, %s869_s1  ;;  %p873_p2 = scmp.lt.u32.totalorder %s869_s1, %s1109_s8 }
 0x5ed   :  { %p875_p3 = pnand %p873_p2, %p870_p1 }
 0x5ef   :  { %878 = shalt.err (!%p875_p3)
}
 0x5f0   :  { %665 = dma.vmem_to_hbm [thread:$0]  %s660_s25, 256, %s1109_s8, [#allocation10], %s911_s17, %s911_s17, %s912_s18  }
 0x5f1   :  { %v688_v14 = vld [vmem:[%s1106_s5] ss:$0 sm:$0xff]  ;;  %s919_s8 = smov [#allocation8]  }
 0x5f2   :  { %v689_v16 = vld [vmem:[%s1107_s6] ss:$0 sm:$0xff]  ;;  %s647_s20 = sshll.u32 %s919_s8, 4  ;;  %s648_s20 = int_to_ptr.vmem [resolvable:$true] %s647_s20 }
 0x5f3   :  { %s879_s0 = scalar_lea.vmem %s648_s20, 256  ;;  %p884_p5 = scmp.lt.s32.totalorder %s648_s20, %s648_s20 }
 0x5f4   :  { %p880_p4 = scmp.ne.s32.totalorder %s648_s20, %s879_s0  ;;  %p885_p6 = scmp.lt.s32.totalorder %s879_s0, %s879_s0 }
 0x5f6   :  { %p886_p7 = por %p885_p6, %p884_p5 }
 0x5f8   :  { %p887_p8 = pnand %p886_p7, %p880_p4 }
 0x671   :  { %v610_v5 = vpop.xlane.xlu0 %609 }
 0x672   :  { %v614_v8 = vmul.f32 0.03125, %v610_v5 }
 0x674   :  { %v616_v9 = vadd.f32 1e-06, %v614_v8 }
 0x675   :  { %v613_v10 = vpop.xlane.xlu0 %612 }
 0x676   :  { %787 = vrsqrt.f32 %v616_v9  ;;  %v615_v11 = vmul.f32 0.03125, %v613_v10 }
 0x678   :  { %v617_v12 = vadd.f32 1e-06, %v615_v11 }
 0x67a   :  { %789 = vrsqrt.f32 %v617_v12 }
 0x680   :  { %v788_v13 = vpop.eup %787 }
 0x681   :  { %v620_v15 = vmul.f32 %v788_v13, %v604_v2 }
 0x683   :  { %v629_v17 = vmul.f32 %v688_v14, %v620_v15 }
 0x684   :  { %v790_v18 = vpop.eup %789 }
 0x685   :  { %v621_v19 = vmul.f32 %v790_v18, %v605_v1  ;;  %v638_v20 = vadd.f32 %v689_v16, %v629_v17 }
 0x687   :  { %v630_v21 = vmul.f32 %v688_v14, %v621_v19  ;;  %640 = vst.msk [vmem:[#allocation8] sm:$0xff] %vm84_vm0, %v638_v20 }
 0x689   :  { %v639_v22 = vadd.f32 %v689_v16, %v630_v21 }
 0x68b   :  { %641 = vst.msk [vmem:[#allocation8 + $0x8] sm:$0xff] %vm84_vm0, %v639_v22 }
 0x68c   :  { %890 = shalt.err (!%p887_p8)
}
 0x68d   :  { %s891_s30 = scalar_lea.hbm %s1108_s7, 256 }
 0x68e   :  { %p892_p9 = scmp.ne.s32.totalorder %s1108_s7, %s891_s30  ;;  %p895_p10 = scmp.lt.u32.totalorder %s891_s30, %s1108_s7 }
 0x690   :  { %p897_p11 = pnand %p895_p10, %p892_p9 }
 0x692   :  { %900 = shalt.err (!%p897_p11)
}
 0x693   :  { %653 = dma.vmem_to_hbm [thread:$0]  %s648_s20, 256, %s1108_s7, [#allocation4], %s911_s17, %s911_s17, %s912_s18  }
 0x694   :  { %905 = dma.done.wait [#allocation4], 256  }
 0x695   :  { %906 = vsyncadd [#allocation4], 4294967040 }
 0x696   :  { %907 = dma.done.wait [#allocation10], 256  }
 0x697   :  { %908 = vsyncadd [#allocation10], 4294967040 }
 0x698   :  { %672 = vsyncpa [#allocation3], 1 }
 0x699   :  { %673 = vsyncpa [#allocation6], 1 }
 0x69a   :  { %674 = vsyncpa [#allocation4], 1 }
 0x69b   :  { %675 = vsyncpa [#allocation10], 1 }

</bundles_post_ra>
